<compile_context>
chip_gen: v7x
topology: tpu7x:2x2x1
jax: 0.10.0
libtpu: 0.0.40
codegen_flags: <defaults>
</compile_context>

<pallas_src>
import functools

import numpy as np
import jax
import jax.numpy as jnp
from jax import lax
from jax.experimental import pallas as pl
from jax.experimental.pallas import tpu as pltpu


def _crf_kernel(i_blk_ref, j_blk_ref, u_ref, v_ref, a_ref, b_ref, out_ref,
                *, bf16_exp: bool):
    p = pl.program_id(1)

    @pl.when(p == 0)
    def _():
        out_ref[...] = jnp.zeros_like(out_ref)

    # Pairwise squared feature distance in ONE MXU matmul (norms precomputed):
    #   u_i = [f_i, 1, ||f_i||^2, 0],  v_j = [-2 f_j, ||f_j||^2, 1, 0]
    #   u_i . v_j = ||f_i||^2 + ||f_j||^2 - 2 f_i.f_j = d2_ij
    d2 = lax.dot_general(u_ref[...], v_ref[...], (((1,), (1,)), ((), ())),
                         preferred_element_type=jnp.float32)        # (Ti, Tj)
    d2 = jnp.maximum(d2, 0.0)        # guard tiny negatives from cancellation
    arg = -0.5 * d2
    if bf16_exp:
        w = jnp.exp(arg.astype(jnp.bfloat16))   # bf16 EUP on v6e/v7x (~2x)
    else:
        w = jnp.exp(arg)

    # MXU contraction replaces the P^2 elementwise w*pairwise + big reduce:
    #   A_i = [-2 S_i, 1, r_i],  B_j = [S_j, r_j, 1]
    #   sum(A_i * (W @ B_j)) = sum_ij w_ij (r_i + r_j - 2 S_i.S_j)
    wb = jnp.dot(w, b_ref[...].astype(w.dtype),
                 preferred_element_type=jnp.float32)                 # (Ti, Ka)

    # Symmetry bookkeeping: the r_i + r_j form already counts (i,j) and (j,i)
    # for off-diagonal tile pairs (scale 1); diagonal tiles are double-counted
    # by it, so scale 0.5 there.
    scale = jnp.where(i_blk_ref[p] == j_blk_ref[p], 0.5, 1.0).astype(jnp.float32)
    out_ref[...] += scale * (a_ref[...] * wb)


def crf_loss(inp, image, sigma_xy=15.0, sigma_rgb=0.125, *, tile=512,
             bf16_exp=None):
    """inp: (N, K, H, W) float; image: (N, 3, H, W) -> scalar dense-CRF loss."""
    inp = inp.astype(jnp.float32)
    image = image.astype(jnp.float32)          # mirrors image.float()

    if bf16_exp is None:
        # bf16 EUP exp only pays off (and is only native) on v6e / v7x.
        try:
            kind = jax.devices()[0].device_kind.lower()
            bf16_exp = not any(v in kind for v in ("v2", "v3", "v4", "v5"))
        except Exception:
            bf16_exp = False

    N, K, H, W = inp.shape
    P = H * W

    tile = max(128, (min(tile, P) // 128) * 128)
    P_pad = ((P + tile - 1) // tile) * tile

    # ---- wrapper glue: per-pixel features / predictions + hoisted precomputes
    ys, xs = jnp.meshgrid(jnp.arange(H, dtype=jnp.float32),
                          jnp.arange(W, dtype=jnp.float32), indexing="ij")
    pos = jnp.stack([xs, ys], axis=-1).reshape(P, 2) / sigma_xy
    rgb = jnp.transpose(image, (0, 2, 3, 1)).reshape(N, P, 3) / sigma_rgb
    f = jnp.concatenate([jnp.broadcast_to(pos[None], (N, P, 2)), rgb], axis=-1)
    sq = jnp.sum(f * f, axis=-1, keepdims=True)                      # ||f||^2
    one = jnp.ones((N, P, 1), jnp.float32)
    zero = jnp.zeros((N, P, 1), jnp.float32)
    u = jnp.concatenate([f, one, sq, zero], axis=-1)                  # (N,P,8)
    v = jnp.concatenate([-2.0 * f, sq, one, zero], axis=-1)           # (N,P,8)

    S = jnp.transpose(inp, (0, 2, 3, 1)).reshape(N, P, K)
    r = jnp.sum(S, axis=-1, keepdims=True)                            # rowsum
    Ka = max(8, ((K + 2 + 7) // 8) * 8)
    A = jnp.concatenate([-2.0 * S, one, r], axis=-1)                  # (N,P,K+2)
    B = jnp.concatenate([S, r, one], axis=-1)
    A = jnp.pad(A, ((0, 0), (0, 0), (0, Ka - (K + 2))))
    B = jnp.pad(B, ((0, 0), (0, 0), (0, Ka - (K + 2))))

    if P_pad != P:  # zero rows of u/v/A/B contribute exactly zero to the loss
        pad = ((0, 0), (0, P_pad - P), (0, 0))
        u, v, A, B = (jnp.pad(x, pad) for x in (u, v, A, B))

    # ---- upper-triangular tile-pair list (i <= j): ~2x less work ----
    nb = P_pad // tile
    ii, jj = np.triu_indices(nb)
    i_blk = jnp.asarray(ii, jnp.int32)
    j_blk = jnp.asarray(jj, jnp.int32)
    n_pairs = int(ii.shape[0])

    cost = pl.CostEstimate(
        flops=int(N * n_pairs * tile * tile * (2 * 8 + 2 * Ka + 3)),
        transcendentals=int(N * n_pairs * tile * tile),
        bytes_accessed=int(N * n_pairs * 2 * tile * (8 + Ka) * 4
                           + N * tile * Ka * 4),
    )

    out = pl.pallas_call(
        functools.partial(_crf_kernel, bf16_exp=bf16_exp),
        out_shape=jax.ShapeDtypeStruct((N, tile, Ka), jnp.float32),
        grid_spec=pltpu.PrefetchScalarGridSpec(
            num_scalar_prefetch=2,
            grid=(N, n_pairs),
            in_specs=[
                pl.BlockSpec((None, tile, 8), lambda n, p, ib, jb: (n, ib[p], 0)),
                pl.BlockSpec((None, tile, 8), lambda n, p, ib, jb: (n, jb[p], 0)),
                pl.BlockSpec((None, tile, Ka), lambda n, p, ib, jb: (n, ib[p], 0)),
                pl.BlockSpec((None, tile, Ka), lambda n, p, ib, jb: (n, jb[p], 0)),
            ],
            out_specs=pl.BlockSpec((None, tile, Ka),
                                   lambda n, p, ib, jb: (n, 0, 0)),
        ),
        compiler_params=pltpu.CompilerParams(
            dimension_semantics=("parallel", "arbitrary")),
        cost_estimate=cost,
    )(i_blk, j_blk, u, v, A, B)

    return jnp.sum(out)


def _reference(inp, image, sigma_xy, sigma_rgb):
    """Pure-JAX brute-force reference for correctness checking."""
    inp = inp.astype(jnp.float32)
    image = image.astype(jnp.float32)
    N, K, H, W = inp.shape
    P = H * W
    ys, xs = jnp.meshgrid(jnp.arange(H, dtype=jnp.float32),
                          jnp.arange(W, dtype=jnp.float32), indexing="ij")
    pos = jnp.stack([xs, ys], -1).reshape(P, 2) / sigma_xy
    total = 0.0
    for n in range(N):
        f = jnp.concatenate(
            [pos, jnp.transpose(image[n], (1, 2, 0)).reshape(P, 3) / sigma_rgb],
            axis=-1)
        d2 = jnp.sum((f[:, None, :] - f[None, :, :]) ** 2, axis=-1)
        w = jnp.exp(-0.5 * d2)
        s = jnp.transpose(inp[n], (1, 2, 0)).reshape(P, K)
        pairwise = jnp.sum(s, -1, keepdims=True) - s @ s.T
        total = total + jnp.sum(w * pairwise)
    return total


if __name__ == "__main__":
    key = jax.random.PRNGKey(0)
    k1, k2 = jax.random.split(key)

    N, K, H, W = 2, 4, 16, 16
    # prediction: softmax over the class channel (as a segmentation net emits)
    logits = jax.random.normal(k1, (N, K, H, W), jnp.float32)
    inp = jax.nn.softmax(logits, axis=1)
    # image: RGB in [0, 1]
    image = jax.random.uniform(k2, (N, 3, H, W), jnp.float32)

    sigma_xy, sigma_rgb = 15.0, 0.125

    ref = _reference(inp, image, sigma_xy, sigma_rgb)

    # tile=128 exercises the upper-triangular multi-tile path (diag + off-diag)
    loss_small = jax.block_until_ready(
        crf_loss(inp, image, sigma_xy, sigma_rgb, tile=128))
    # default tile (clamped to P=256) exercises the single-diagonal-tile path
    loss_big = jax.block_until_ready(
        crf_loss(inp, image, sigma_xy, sigma_rgb))

    assert jnp.allclose(loss_small, ref, rtol=2e-2, atol=1e-2), (loss_small, ref)
    assert jnp.allclose(loss_big, ref, rtol=2e-2, atol=1e-2), (loss_big, ref)

    print("KERNEL_OK")
</pallas_src>

<mosaic_0001>
module attributes {stable_mosaic.version = 11 : i64} {
  func.func @_crf_kernel(%arg0: i32, %arg1: i32, %arg2: memref<3xi32, #tpu.memory_space<smem>>, %arg3: memref<3xi32, #tpu.memory_space<smem>>, %arg4: memref<1x128x8xf32, #tpu.memory_space<vmem>>, %arg5: memref<1x128x8xf32, #tpu.memory_space<vmem>>, %arg6: memref<1x128x8xf32, #tpu.memory_space<vmem>>, %arg7: memref<1x128x8xf32, #tpu.memory_space<vmem>>, %arg8: memref<1x128x8xf32, #tpu.memory_space<vmem>>) attributes {dimension_semantics = [#tpu.dimension_semantics<parallel>, #tpu.dimension_semantics<arbitrary>], iteration_bounds = array<i64: 2, 3>, scalar_prefetch = 2 : i64, scratch_operands = 0 : i64, tpu.core_type = #tpu.core_type<tc>, window_params = [{transform_indices = @transform_0, window_bounds = array<i64: 1, 128, 8>}, {transform_indices = @transform_1, window_bounds = array<i64: 1, 128, 8>}, {transform_indices = @transform_2, window_bounds = array<i64: 1, 128, 8>}, {transform_indices = @transform_3, window_bounds = array<i64: 1, 128, 8>}, {transform_indices = @transform_4, window_bounds = array<i64: 1, 128, 8>}]} {
    %c0_i32 = arith.constant 0 : i32
    %0 = arith.cmpi eq, %arg1, %c0_i32 : i32
    %1 = arith.extui %0 : i1 to i32
    %c0_i32_0 = arith.constant 0 : i32
    %2 = arith.cmpi ne, %1, %c0_i32_0 : i32
    scf.if %2 {
      %cst_23 = arith.constant 0.000000e+00 : f32
      %35 = vector.broadcast %cst_23 : f32 to vector<128x8xf32>
      %c0_24 = arith.constant 0 : index
      %c0_25 = arith.constant 0 : index
      %c0_26 = arith.constant 0 : index
      %36 = vector.load %arg8[%c0_24, %c0_25, %c0_26] : memref<1x128x8xf32, #tpu.memory_space<vmem>>, vector<1x128x8xf32>
      %37 = vector.shape_cast %36 : vector<1x128x8xf32> to vector<128x8xf32>
      %38 = vector.shape_cast %35 : vector<128x8xf32> to vector<1x128x8xf32>
      tpu.vector_store %arg8[%c0_24, %c0_25, %c0_26], %38 {strides = array<i32>} : memref<1x128x8xf32, #tpu.memory_space<vmem>>, vector<1x128x8xf32>,
    } else {
    }
    %c0 = arith.constant 0 : index
    %c0_1 = arith.constant 0 : index
    %c0_2 = arith.constant 0 : index
    %3 = vector.load %arg4[%c0, %c0_1, %c0_2] : memref<1x128x8xf32, #tpu.memory_space<vmem>>, vector<1x128x8xf32>
    %4 = vector.shape_cast %3 : vector<1x128x8xf32> to vector<128x8xf32>
    %c0_3 = arith.constant 0 : index
    %c0_4 = arith.constant 0 : index
    %c0_5 = arith.constant 0 : index
    %5 = vector.load %arg5[%c0_3, %c0_4, %c0_5] : memref<1x128x8xf32, #tpu.memory_space<vmem>>, vector<1x128x8xf32>
    %6 = vector.shape_cast %5 : vector<1x128x8xf32> to vector<128x8xf32>
    %cst = arith.constant dense<0.000000e+00> : vector<128x128xf32>
    %7 = tpu.matmul %4, %6, %cst {dimension_numbers = #tpu.dot_dimension_numbers<[1], [1], [0], [0], [0, 0, 1, 0], [], []>} : vector<128x8xf32>, vector<128x8xf32>, vector<128x128xf32> -> vector<128x128xf32>
    %cst_6 = arith.constant 0.000000e+00 : f32
    %8 = vector.broadcast %cst_6 : f32 to vector<128x128xf32>
    %9 = arith.maximumf %7, %8 : vector<128x128xf32>
    %cst_7 = arith.constant -5.000000e-01 : f32
    %10 = vector.broadcast %cst_7 : f32 to vector<128x128xf32>
    %11 = arith.mulf %10, %9 : vector<128x128xf32>
    %12 = arith.truncf %11 : vector<128x128xf32> to vector<128x128xbf16>
    %13 = math.exp %12 : vector<128x128xbf16>
    %c0_8 = arith.constant 0 : index
    %c0_9 = arith.constant 0 : index
    %c0_10 = arith.constant 0 : index
    %14 = vector.load %arg7[%c0_8, %c0_9, %c0_10] : memref<1x128x8xf32, #tpu.memory_space<vmem>>, vector<1x128x8xf32>
    %15 = vector.shape_cast %14 : vector<1x128x8xf32> to vector<128x8xf32>
    %16 = arith.truncf %15 : vector<128x8xf32> to vector<128x8xbf16>
    %cst_11 = arith.constant dense<0.000000e+00> : vector<128x8xf32>
    %17 = tpu.matmul %13, %16, %cst_11 {dimension_numbers = #tpu.dot_dimension_numbers<[1], [0], [0], [1], [0, 0, 1, 1], [], []>} : vector<128x128xbf16>, vector<128x8xbf16>, vector<128x8xf32> -> vector<128x8xf32>
    %18 = arith.index_cast %arg1 : i32 to index
    %19 = memref.load %arg2[%18] : memref<3xi32, #tpu.memory_space<smem>>
    %20 = arith.index_cast %arg1 : i32 to index
    %21 = memref.load %arg3[%20] : memref<3xi32, #tpu.memory_space<smem>>
    %22 = arith.cmpi eq, %19, %21 : i32
    %cst_12 = arith.constant 5.000000e-01 : f32
    %cst_13 = arith.constant 1.000000e+00 : f32
    %23 = arith.select %22, %cst_12, %cst_13 : f32
    %c0_14 = arith.constant 0 : index
    %c0_15 = arith.constant 0 : index
    %c0_16 = arith.constant 0 : index
    %24 = vector.load %arg8[%c0_14, %c0_15, %c0_16] : memref<1x128x8xf32, #tpu.memory_space<vmem>>, vector<1x128x8xf32>
    %25 = vector.shape_cast %24 : vector<1x128x8xf32> to vector<128x8xf32>
    %c0_17 = arith.constant 0 : index
    %c0_18 = arith.constant 0 : index
    %c0_19 = arith.constant 0 : index
    %26 = vector.load %arg6[%c0_17, %c0_18, %c0_19] : memref<1x128x8xf32, #tpu.memory_space<vmem>>, vector<1x128x8xf32>
    %27 = vector.shape_cast %26 : vector<1x128x8xf32> to vector<128x8xf32>
    %28 = arith.mulf %27, %17 : vector<128x8xf32>
    %29 = vector.broadcast %23 : f32 to vector<128x8xf32>
    %30 = arith.mulf %29, %28 : vector<128x8xf32>
    %31 = arith.addf %25, %30 : vector<128x8xf32>
    %c0_20 = arith.constant 0 : index
    %c0_21 = arith.constant 0 : index
    %c0_22 = arith.constant 0 : index
    %32 = vector.load %arg8[%c0_20, %c0_21, %c0_22] : memref<1x128x8xf32, #tpu.memory_space<vmem>>, vector<1x128x8xf32>
    %33 = vector.shape_cast %32 : vector<1x128x8xf32> to vector<128x8xf32>
    %34 = vector.shape_cast %31 : vector<128x8xf32> to vector<1x128x8xf32>
    tpu.vector_store %arg8[%c0_20, %c0_21, %c0_22], %34 {strides = array<i32>} : memref<1x128x8xf32, #tpu.memory_space<vmem>>, vector<1x128x8xf32>,
    return
  }
  func.func @transform_0(%arg0: i32, %arg1: i32, %arg2: memref<3xi32, #tpu.memory_space<smem>>, %arg3: memref<3xi32, #tpu.memory_space<smem>>) -> (i32, i32, i32) {
    %0 = arith.index_cast %arg1 : i32 to index
    %1 = memref.load %arg2[%0] : memref<3xi32, #tpu.memory_space<smem>>
    %c0_i32 = arith.constant 0 : i32
    %c0_i32_0 = arith.constant 0 : i32
    return %arg0, %1, %c0_i32 : i32, i32, i32
  }
  func.func @transform_1(%arg0: i32, %arg1: i32, %arg2: memref<3xi32, #tpu.memory_space<smem>>, %arg3: memref<3xi32, #tpu.memory_space<smem>>) -> (i32, i32, i32) {
    %0 = arith.index_cast %arg1 : i32 to index
    %1 = memref.load %arg3[%0] : memref<3xi32, #tpu.memory_space<smem>>
    %c0_i32 = arith.constant 0 : i32
    %c0_i32_0 = arith.constant 0 : i32
    return %arg0, %1, %c0_i32 : i32, i32, i32
  }
  func.func @transform_2(%arg0: i32, %arg1: i32, %arg2: memref<3xi32, #tpu.memory_space<smem>>, %arg3: memref<3xi32, #tpu.memory_space<smem>>) -> (i32, i32, i32) {
    %0 = arith.index_cast %arg1 : i32 to index
    %1 = memref.load %arg2[%0] : memref<3xi32, #tpu.memory_space<smem>>
    %c0_i32 = arith.constant 0 : i32
    %c0_i32_0 = arith.constant 0 : i32
    return %arg0, %1, %c0_i32 : i32, i32, i32
  }
  func.func @transform_3(%arg0: i32, %arg1: i32, %arg2: memref<3xi32, #tpu.memory_space<smem>>, %arg3: memref<3xi32, #tpu.memory_space<smem>>) -> (i32, i32, i32) {
    %0 = arith.index_cast %arg1 : i32 to index
    %1 = memref.load %arg3[%0] : memref<3xi32, #tpu.memory_space<smem>>
    %c0_i32 = arith.constant 0 : i32
    %c0_i32_0 = arith.constant 0 : i32
    return %arg0, %1, %c0_i32 : i32, i32, i32
  }
  func.func @transform_4(%arg0: i32, %arg1: i32, %arg2: memref<3xi32, #tpu.memory_space<smem>>, %arg3: memref<3xi32, #tpu.memory_space<smem>>) -> (i32, i32, i32) {
    %c0_i32 = arith.constant 0 : i32
    %c0_i32_0 = arith.constant 0 : i32
    %c0_i32_1 = arith.constant 0 : i32
    return %arg0, %c0_i32, %c0_i32_0 : i32, i32, i32
  }
}

</mosaic_0001>

<bundles_post_ra>
// kernel: tpu_custom_call.1
= control target key start
LH: loop header
LB: loop body
LE: loop exit
PB: predicated region body
PF: predicated region fallthrough
CT: control target
= control target key end

     0   :  { %s1785_s0 = inlined_call_operand.vmem [shape: s32[3], index: 0, kind: input, shape index: {}]   ;;  %s1786_s2 = inlined_call_operand.vmem [shape: f32[2,256,8], index: 2, kind: input, shape index: {}]   ;;  %s1787_s3 = inlined_call_operand.vmem [shape: f32[2,256,8], index: 3, kind: input, shape index: {}]   ;;  %s1788_s4 = inlined_call_operand.vmem [shape: f32[2,256,8], index: 4, kind: input, shape index: {}]   ;;  %s1789_s5 = inlined_call_operand.vmem [shape: f32[2,256,8], index: 5, kind: input, shape index: {}]   ;;  %s1790_s6 = inlined_call_operand.vmem [shape: f32[2,128,8], index: 6, kind: output, shape index: {}]   ;;  %s1791_s1 = inlined_call_operand.vmem [shape: s32[3], index: 1, kind: input, shape index: {}]  }
   0x1   :  { %s11_s23 = sshll.u32 %s1785_s0, 4  ;;  %s15_s26 = sshll.u32 %s1791_s1, 4  ;;  %s12_s23 = int_to_ptr.vmem [resolvable:$true] %s11_s23  ;;  %s16_s26 = int_to_ptr.vmem [resolvable:$true] %s15_s26 }
   0x2   :  { %s1380_s27 = scalar_lea.vmem %s12_s23, 16  ;;  %p1385_p1 = scmp.lt.s32.totalorder %s12_s23, %s12_s23 }
   0x3   :  { %p1381_p0 = scmp.ne.s32.totalorder %s12_s23, %s1380_s27  ;;  %p1386_p2 = scmp.lt.s32.totalorder %s1380_s27, %s1380_s27 }
   0x5   :  { %p1387_p3 = por %p1386_p2, %p1385_p1 }
   0x7   :  { %p1388_p4 = pnand %p1387_p3, %p1381_p0 }
   0x9   :  { %1391 = shalt.err (!%p1388_p4)  }
   0xa   :  { %s1446_s28 = smov [#allocation3]   ;;  %s1392_s29 = scalar_lea.vmem %s16_s26, 16 }
   0xb   :  { %14 = dma.vmem_to_smem %s12_s23, 16, %s1446_s28, [#allocation2] }
   0xc   :  { %p1393_p5 = scmp.ne.s32.totalorder %s16_s26, %s1392_s29  ;;  %p1397_p6 = scmp.lt.s32.totalorder %s16_s26, %s16_s26 }
   0xd   :  { %p1398_p7 = scmp.lt.s32.totalorder %s1392_s29, %s1392_s29 }
   0xf   :  { %p1399_p8 = por %p1398_p7, %p1397_p6 }
  0x11   :  { %p1400_p9 = pnand %p1399_p8, %p1393_p5 }
  0x13   :  { %1403 = shalt.err (!%p1400_p9)  }
  0x14   :  { %s1447_s0 = smov [#allocation4]  }
  0x15   :  { %18 = dma.vmem_to_smem %s16_s26, 16, %s1447_s0, [#allocation2] }
  0x16   :  { %1424 = dma.done.wait [#allocation2], 32 }
  0x17   :  { %1425 = vsyncadd [#allocation2], 4294967264 }
  0x18   :  { %20 = sfence }
  0x19   :  { %s1490_s1 = smov 0   ;;  %s1492_s30 = smov 0  }
  0x1a   :  { %s1494_s7 = smov 0   ;;  %s1496_s8 = smov 0  }
  0x1b   :  { %s1498_s9 = smov 0  }
  0x1c LB: > { %s35_s10 = sadd.s32 1, %s1436_s7  ;;  %s38_s11 = sadd.s32 1, %s1440_s8  ;;  %s1444_s9 = sphi %s1498_s9, %s26_s9   ;;  %s1440_s8 = sphi %s1496_s8, %s1797_s8   ;;  %s1436_s7 = sphi %s1494_s7, %s1796_s7   ;;  %s1432_s30 = sphi %s1492_s30, %s1795_s30   ;;  %s1428_s1 = sphi %s1490_s1, %s1794_s1  }
  0x1d   : > { %p36_p10 = scmp.ge.s32.totalorder %s35_s10, 3  ;;  %p1086_p11 = scmp.ge.s32.totalorder %s1444_s9, 1 }
  0x1e   : > { %p260_p12 = scmp.lt.s32.totalorder %s1444_s9, 7 }
  0x1f   : > { %s1799_s10 = smov (%p36_p10, %s35_s10), 0  ;;  %s1801_s11 = smov (!%p36_p10, %s38_s11), %s1440_s8 }
  0x20   : > { %p261_p13 = pnand %p1086_p11, %p260_p12  ;;  %p40_p0 = scmp.ge.s32.totalorder %s1801_s11, 2 }
  0x21   : > { %s321_s12 = sld [smem:[#allocation3 + %s1428_s1]] (!%p261_p13)  ;;  %p323_p1 = scmp.lt.s32.totalorder (!%p261_p13), %s1432_s30, 1 }
  0x22   : > { %s1803_s11 = smov (%p40_p0, %s1801_s11), 0  ;;  %264 = sbr.rel (%p261_p13) target bundleno = 608 (0x260), region = 36 }
  0x23   : > { %s333_s13 = sld [smem:[#allocation4 + %s1428_s1]] (!%p261_p13)  ;;  %p1101_p6 = scmp.ne.s32.totalorder (!%p261_p13), %s1428_s1, 0 }
  0x24   : > { %s345_s14 = sld [smem:[#allocation3 + %s1428_s1]] (!%p261_p13) }
  0x25   : > { %s357_s16 = sld [smem:[#allocation4 + %s1428_s1]] (!%p261_p13) }
  0x27   : > { %s1087_s20 = sshll.u32 (!%p261_p13), %s321_s12, 4 }
  0x28   : > { %p325_p2 = scmp.lt.s32.totalorder (!%p261_p13), %s1087_s20, 31 }
  0x29   : > { %s1805_s30 = smov (!%p323_p1, %s1432_s30), 1  ;;  %s1090_s22 = sshll.u32 %s333_s13, 4  ;;  %vm379_vm0 = vcmask (!%p1101_p6), 64512   ;;  %v1448_v0 = vmov (!%p1101_p6), 0.0  }
  0x2a   : > { %s1136_s15 = sshll.u32 %s1805_s30, 7  ;;  %s1088_s21 = sshll.u32 %s1805_s30, 5 }
  0x2b   : > { %s1529_s19 = scalar_lea.vmem %s1790_s6, %s1136_s15  ;;  %p337_p3 = scmp.lt.s32.totalorder %s1090_s22, 31 }
  0x2c   : > { %s1093_s23 = sshll.u32 %s345_s14, 4  ;;  %s1807_s20 = smov (!%p325_p2, %s1087_s20), 31  ;;  %380 = vst.msk [vmem:[%s1529_s19] sm:$0xff] (!%p1101_p6), %vm379_vm0, %v1448_v0  ;;  %381 = vst.msk [vmem:[%s1529_s19 + $0x8] sm:$0xff] (!%p1101_p6), %vm379_vm0, %v1448_v0 }
  0x2d   : > { %s1809_s22 = smov (!%p337_p3, %s1090_s22), 31  ;;  %s328_s24 = sadd.s32 %s1088_s21, %s1807_s20  ;;  %382 = vst.msk [vmem:[%s1529_s19 + $0x10] sm:$0xff] (!%p1101_p6), %vm379_vm0, %v1448_v0  ;;  %383 = vst.msk [vmem:[%s1529_s19 + $0x18] sm:$0xff] (!%p1101_p6), %vm379_vm0, %v1448_v0 }
  0x2e   : > { %p349_p4 = scmp.lt.s32.totalorder %s1093_s23, 31  ;;  %s1089_s25 = sshll.u32 %s328_s24, 3  ;;  %384 = vst.msk [vmem:[%s1529_s19 + $0x20] sm:$0xff] (!%p1101_p6), %vm379_vm0, %v1448_v0  ;;  %385 = vst.msk [vmem:[%s1529_s19 + $0x28] sm:$0xff] (!%p1101_p6), %vm379_vm0, %v1448_v0 }
  0x2f   : > { %s340_s26 = sadd.s32 %s1088_s21, %s1809_s22  ;;  %s1534_s29 = scalar_lea.vmem %s1786_s2, %s1089_s25  ;;  %386 = vst.msk [vmem:[%s1529_s19 + $0x30] sm:$0xff] (!%p1101_p6), %vm379_vm0, %v1448_v0  ;;  %387 = vst.msk [vmem:[%s1529_s19 + $0x38] sm:$0xff] (!%p1101_p6), %vm379_vm0, %v1448_v0 }
  0x30   : > { %s1092_s0 = sshll.u32 %s340_s26, 3  ;;  %s1096_s12 = sshll.u32 %s357_s16, 4  ;;  %388 = vst.msk [vmem:[%s1529_s19 + $0x40] sm:$0xff] (!%p1101_p6), %vm379_vm0, %v1448_v0  ;;  %389 = vst.msk [vmem:[%s1529_s19 + $0x48] sm:$0xff] (!%p1101_p6), %vm379_vm0, %v1448_v0 }
  0x31   : > { %s1539_s30 = scalar_lea.vmem %s1787_s3, %s1092_s0  ;;  %s1811_s23 = smov (!%p349_p4, %s1093_s23), 31  ;;  %390 = vst.msk [vmem:[%s1529_s19 + $0x50] sm:$0xff] (!%p1101_p6), %vm379_vm0, %v1448_v0  ;;  %391 = vst.msk [vmem:[%s1529_s19 + $0x58] sm:$0xff] (!%p1101_p6), %vm379_vm0, %v1448_v0 }
  0x32   : > { %p361_p5 = scmp.lt.s32.totalorder %s1096_s12, 31  ;;  %s352_s13 = sadd.s32 %s1088_s21, %s1811_s23  ;;  %392 = vst.msk [vmem:[%s1529_s19 + $0x60] sm:$0xff] (!%p1101_p6), %vm379_vm0, %v1448_v0  ;;  %393 = vst.msk [vmem:[%s1529_s19 + $0x68] sm:$0xff] (!%p1101_p6), %vm379_vm0, %v1448_v0 }
  0x33   : > { %s1095_s14 = sshll.u32 %s352_s13, 3  ;;  %378 = sbr.rel (%p1101_p6) target bundleno = 58 (0x3a), region = 40  ;;  %394 = vst.msk [vmem:[%s1529_s19 + $0x70] sm:$0xff] (!%p1101_p6), %vm379_vm0, %v1448_v0  ;;  %395 = vst.msk [vmem:[%s1529_s19 + $0x78] sm:$0xff] (!%p1101_p6), %vm379_vm0, %v1448_v0 }
  0x34   : > { %s1544_s22 = scalar_lea.vmem %s1788_s4, %s1095_s14  ;;  %s1813_s12 = smov (!%p361_p5, %s1096_s12), 31 }
  0x35   : > { %s364_s24 = sadd.s32 %s1088_s21, %s1813_s12 }
  0x36   : > { %s1098_s25 = sshll.u32 %s364_s24, 3 }
  0x37   : > { %s1549_s28 = scalar_lea.vmem %s1789_s5, %s1098_s25 }
  0x3a PF: > { %v412_v1 = vld [vmem:[%s1539_s30] sm:$0xff]  ;;  %v413_v2 = vld [vmem:[%s1539_s30 + $0x8] sm:$0xff]  ;;  %vm428_vm1 = vcmask 64512   ;;  %v414_v3 = vld [vmem:[%s1539_s30 + $0x10] sm:$0xff]  ;;  %s855_s16 = sld [smem:[#allocation3 + %s1428_s1]] }
  0x3b   : > { %v1273_v4 = vpack.c.bf16 %v413_v2, %v412_v1  ;;  %vm1589_vm2 = vmpackc.low %vm428_vm1, %vm428_vm1  ;;  %v415_v6 = vld [vmem:[%s1539_s30 + $0x18] sm:$0xff]  ;;  %v396_v8 = vld [vmem:[%s1534_s29] sm:$0xff]  ;;  %s856_s21 = sld [smem:[#allocation4 + %s1428_s1]] }
  0x3c   : > { %v1279_v7 = vpack.c.bf16 %v415_v6, %v414_v3  ;;  %v416_v9 = vld [vmem:[%s1539_s30 + $0x20] sm:$0xff]  ;;  %v417_v10 = vld [vmem:[%s1539_s30 + $0x28] sm:$0xff]  ;;  %1217 = vmatprep.mubr.msk.f32.mxu0 %vm428_vm1, %v396_v8  ;;  %v736_v14 = vld [vmem:[%s1549_s28 + $0x10] sm:$0xff] }
  0x3d   : > { %1275 = vmatprep.subr.msk.bf16.mxu0 %vm1589_vm2, %v1273_v4  ;;  %v1285_v11 = vpack.c.bf16 %v417_v10, %v416_v9  ;;  %v734_v12 = vld [vmem:[%s1549_s28] sm:$0xff]  ;;  %v735_v13 = vld [vmem:[%s1549_s28 + $0x8] sm:$0xff]  ;;  %v737_v16 = vld [vmem:[%s1549_s28 + $0x18] sm:$0xff] }
  0x3e   : > { %1278 = vmatpush3.bf16.xpose.msk.msra.mxu0 %vm1589_vm2, %v1273_v4  ;;  %v750_v15 = vpack.c.bf16 %v735_v13, %v734_v12  ;;  %v751_v17 = vpack.c.bf16 %v737_v16, %v736_v14  ;;  %v418_v18 = vld [vmem:[%s1539_s30 + $0x30] sm:$0xff]  ;;  %v419_v19 = vld [vmem:[%s1539_s30 + $0x38] sm:$0xff]  ;;  %v420_v21 = vld [vmem:[%s1539_s30 + $0x40] sm:$0xff] }
  0x3f   : > { %1281 = vmatprep.subr.msk.bf16.mxu0 %vm1589_vm2, %v1279_v7  ;;  %v1291_v20 = vpack.c.bf16 %v419_v19, %v418_v18  ;;  %v421_v22 = vld [vmem:[%s1539_s30 + $0x48] sm:$0xff]  ;;  %v422_v24 = vld [vmem:[%s1539_s30 + $0x50] sm:$0xff]  ;;  %v423_v25 = vld [vmem:[%s1539_s30 + $0x58] sm:$0xff] }
  0x40   : > { %1241 = vmatprep.subr.bf16.mxu1 %v750_v15  ;;  %v1297_v23 = vpack.c.bf16 %v421_v22, %v420_v21  ;;  %v1303_v26 = vpack.c.bf16 %v423_v25, %v422_v24  ;;  %v424_v27 = vld [vmem:[%s1539_s30 + $0x60] sm:$0xff]  ;;  %v425_v28 = vld [vmem:[%s1539_s30 + $0x68] sm:$0xff]  ;;  %v426_v30 = vld [vmem:[%s1539_s30 + $0x70] sm:$0xff] }
  0x41   : > { %1242 = vmatpush3.bf16.msra.mxu1 %v750_v15  ;;  %v1309_v29 = vpack.c.bf16 %v425_v28, %v424_v27  ;;  %v427_v31 = vld [vmem:[%s1539_s30 + $0x78] sm:$0xff]  ;;  %v397_v33 = vld [vmem:[%s1534_s29 + $0x8] sm:$0xff]  ;;  %v398_v34 = vld [vmem:[%s1534_s29 + $0x10] sm:$0xff]  ;;  %p857_p7 = scmp.eq.s32.totalorder %s855_s16, %s856_s21 }
  0x42   : > { %1243 = vmatprep.subr.bf16.mxu1 %v751_v17  ;;  %v1315_v32 = vpack.c.bf16 %v427_v31, %v426_v30  ;;  %v399_v35 = vld [vmem:[%s1534_s29 + $0x18] sm:$0xff]  ;;  %v400_v36 = vld [vmem:[%s1534_s29 + $0x20] sm:$0xff]  ;;  %v401_v37 = vld [vmem:[%s1534_s29 + $0x28] sm:$0xff] }
  0x43   : > { %v402_v38 = vld [vmem:[%s1534_s29 + $0x30] sm:$0xff]  ;;  %v403_v39 = vld [vmem:[%s1534_s29 + $0x38] sm:$0xff]  ;;  %v404_v40 = vld [vmem:[%s1534_s29 + $0x40] sm:$0xff]  ;;  %s858_s23 = scalar_select %p857_p7, 0.5, 1.0 }
  0x44   : > { %v405_v41 = vld [vmem:[%s1534_s29 + $0x48] sm:$0xff]  ;;  %v406_v42 = vld [vmem:[%s1534_s29 + $0x50] sm:$0xff]  ;;  %v407_v43 = vld [vmem:[%s1534_s29 + $0x58] sm:$0xff] }
  0x45   : > { %1244 = vmatpush3.bf16.msra.mxu1 %v751_v17  ;;  %v408_v44 = vld [vmem:[%s1534_s29 + $0x60] sm:$0xff]  ;;  %v409_v45 = vld [vmem:[%s1534_s29 + $0x68] sm:$0xff]  ;;  %v410_v46 = vld [vmem:[%s1534_s29 + $0x70] sm:$0xff] }
  0x46   : > { %1284 = vmatpush3.bf16.xpose.msk.msra.mxu0 %vm1589_vm2, %v1279_v7  ;;  %v411_v47 = vld [vmem:[%s1534_s29 + $0x78] sm:$0xff]  ;;  %v738_v48 = vld [vmem:[%s1549_s28 + $0x20] sm:$0xff]  ;;  %v739_v49 = vld [vmem:[%s1549_s28 + $0x28] sm:$0xff] }
  0x47   : > { %1287 = vmatprep.subr.msk.bf16.mxu0 %vm1589_vm2, %v1285_v11  ;;  %v752_v50 = vpack.c.bf16 %v739_v49, %v738_v48  ;;  %v740_v51 = vld [vmem:[%s1549_s28 + $0x30] sm:$0xff]  ;;  %v741_v52 = vld [vmem:[%s1549_s28 + $0x38] sm:$0xff]  ;;  %v742_v54 = vld [vmem:[%s1549_s28 + $0x40] sm:$0xff] }
  0x48   : > { %v753_v53 = vpack.c.bf16 %v741_v52, %v740_v51  ;;  %v743_v55 = vld [vmem:[%s1549_s28 + $0x48] sm:$0xff]  ;;  %v744_v57 = vld [vmem:[%s1549_s28 + $0x50] sm:$0xff]  ;;  %v745_v58 = vld [vmem:[%s1549_s28 + $0x58] sm:$0xff] }
  0x49   : > { %1245 = vmatprep.subr.bf16.mxu1 %v752_v50  ;;  %v754_v56 = vpack.c.bf16 %v743_v55, %v742_v54  ;;  %v755_v59 = vpack.c.bf16 %v745_v58, %v744_v57  ;;  %v746_v60 = vld [vmem:[%s1549_s28 + $0x60] sm:$0xff]  ;;  %v747_v61 = vld [vmem:[%s1549_s28 + $0x68] sm:$0xff]  ;;  %v748_v63 = vld [vmem:[%s1549_s28 + $0x70] sm:$0xff] }
  0x4a   : > { %1246 = vmatpush3.bf16.msra.mxu1 %v752_v50  ;;  %v756_v62 = vpack.c.bf16 %v747_v61, %v746_v60  ;;  %v749_v0 = vld [vmem:[%s1549_s28 + $0x78] sm:$0xff] }
  0x4b   : > { %1247 = vmatprep.subr.bf16.mxu1 %v753_v53  ;;  %v757_v1 = vpack.c.bf16 %v749_v0, %v748_v63 }
  0x4e   : > { %1290 = vmatpush3.bf16.xpose.msk.msra.mxu0 %vm1589_vm2, %v1285_v11  ;;  %1248 = vmatpush3.bf16.msra.mxu1 %v753_v53 }
  0x4f   : > { %1293 = vmatprep.subr.msk.bf16.mxu0 %vm1589_vm2, %v1291_v20  ;;  %1249 = vmatprep.subr.bf16.mxu1 %v754_v56 }
  0x52   : > { %1250 = vmatpush3.bf16.msra.mxu1 %v754_v56 }
  0x53   : > { %1251 = vmatprep.subr.bf16.mxu1 %v755_v59 }
  0x56   : > { %1296 = vmatpush3.bf16.xpose.msk.msra.mxu0 %vm1589_vm2, %v1291_v20  ;;  %1252 = vmatpush3.bf16.msra.mxu1 %v755_v59 }
  0x57   : > { %1299 = vmatprep.subr.msk.bf16.mxu0 %vm1589_vm2, %v1297_v23  ;;  %1253 = vmatprep.subr.bf16.mxu1 %v756_v62 }
  0x5a   : > { %1254 = vmatpush3.bf16.msra.mxu1 %v756_v62 }
  0x5b   : > { %1255 = vmatprep.subr.bf16.mxu1 %v757_v1 }
  0x5e   : > { %1302 = vmatpush3.bf16.xpose.msk.msra.mxu0 %vm1589_vm2, %v1297_v23  ;;  %1256 = vmatpush3.bf16.msra.mxu1 %v757_v1 }
  0x5f   : > { %1305 = vmatprep.subr.msk.bf16.mxu0 %vm1589_vm2, %v1303_v26 }
  0x66   : > { %1308 = vmatpush3.bf16.xpose.msk.msra.mxu0 %vm1589_vm2, %v1303_v26 }
  0x67   : > { %1311 = vmatprep.subr.msk.bf16.mxu0 %vm1589_vm2, %v1309_v29 }
  0x6e   : > { %1314 = vmatpush3.bf16.xpose.msk.msra.mxu0 %vm1589_vm2, %v1309_v29 }
  0x6f   : > { %1317 = vmatprep.subr.msk.bf16.mxu0 %vm1589_vm2, %v1315_v32 }
  0x76   : > { %1320 = vmatpush3.bf16.xpose.msk.msra.mxu0 %vm1589_vm2, %v1315_v32 }
  0x7d   : > { %1218 = vmatmul.mubr.msk.f32.vlgmr.msra.gmra.mrb[0].mxu0 %vm428_vm1, %v397_v33 }
  0x7e   : > { %1220 = vmatprep.mubr.msk.f32.mxu0 %vm428_vm1, %v398_v34 }
  0x81   : > { %1221 = vmatmul.mubr.msk.f32.gmra.mrb[2].mxu0 %vm428_vm1, %v399_v35 }
  0x82   : > { %1223 = vmatprep.mubr.msk.f32.mxu0 %vm428_vm1, %v400_v36 }
  0x85   : > { %1224 = vmatmul.mubr.msk.f32.gmra.mrb[4].mxu0 %vm428_vm1, %v401_v37 }
  0x86   : > { %1226 = vmatprep.mubr.msk.f32.mxu0 %vm428_vm1, %v402_v38 }
  0x89   : > { %1227 = vmatmul.mubr.msk.f32.gmra.mrb[6].mxu0 %vm428_vm1, %v403_v39 }
  0x8a   : > { %1229 = vmatprep.mubr.msk.f32.mxu0 %vm428_vm1, %v404_v40 }
  0x8d   : > { %1230 = vmatmul.mubr.msk.f32.gmra.mrb[8].mxu0 %vm428_vm1, %v405_v41 }
  0x8e   : > { %1232 = vmatprep.mubr.msk.f32.mxu0 %vm428_vm1, %v406_v42 }
  0x91   : > { %1233 = vmatmul.mubr.msk.f32.gmra.mrb[10].mxu0 %vm428_vm1, %v407_v43 }
  0x92   : > { %1235 = vmatprep.mubr.msk.f32.mxu0 %vm428_vm1, %v408_v44 }
  0x95   : > { %1236 = vmatmul.mubr.msk.f32.gmra.mrb[12].mxu0 %vm428_vm1, %v409_v45 }
  0x96   : > { %1238 = vmatprep.mubr.msk.f32.mxu0 %vm428_vm1, %v410_v46 }
  0x99   : > { %1239 = vmatmul.mubr.msk.f32.gmra.mrb[14].mxu0 %vm428_vm1, %v411_v47 }
 0x150   : > { %v1219_v2 = vpop.f32.mrb[0].mxu0 }
 0x151   : > { %v671_v3 = vmax.f32 %v1219_v2, 0.0  ;;  %v591_v4 = vpop.f32.mrb[1].mxu0 }
 0x152   : > { %v670_v5 = vmax.f32 %v591_v4, 0.0 }
 0x153   : > { %v687_v6 = vmul.f32 -0.5, %v671_v3 }
 0x154   : > { %v686_v7 = vmul.f32 -0.5, %v670_v5  ;;  %v1222_v8 = vpop.f32.mrb[2].mxu0 }
 0x155   : > { %v673_v9 = vmax.f32 %v1222_v8, 0.0  ;;  %v601_v10 = vpop.f32.mrb[3].mxu0 }
 0x156   : > { %v702_v11 = vpack.c.bf16 %v687_v6, %v686_v7  ;;  %v672_v12 = vmax.f32 %v601_v10, 0.0  ;;  %v877_v10 = vld [vmem:[%s1544_s22 + $0x10] sm:$0xff] }
 0x157   : > { %v689_v13 = vmul.f32 -0.5, %v673_v9 }
 0x158   : > { %v688_v14 = vmul.f32 -0.5, %v672_v12  ;;  %v1225_v15 = vpop.f32.mrb[4].mxu0  ;;  %v711_v16 = vmul.bf16 1069105081, %v702_v11  ;;  %v875_v11 = vld [vmem:[%s1544_s22] sm:$0xff] }
 0x159   : > { %v675_v17 = vmax.f32 %v1225_v15, 0.0  ;;  %v611_v18 = vpop.f32.mrb[5].mxu0 }
 0x15a   : > { %v703_v19 = vpack.c.bf16 %v689_v13, %v688_v14  ;;  %v674_v20 = vmax.f32 %v611_v18, 0.0  ;;  %1364 = vpow.bf16 %v711_v16  ;;  %v1690_v13 = vstv %s858_s23  ;;  %v878_v14 = vld [vmem:[%s1544_s22 + $0x18] sm:$0xff]  ;;  %v861_v18 = vld [vmem:[%s1529_s19 + $0x10] sm:$0xff] }
 0x15b   : > { %v691_v21 = vmul.f32 -0.5, %v675_v17  ;;  %v876_v17 = vld [vmem:[%s1544_s22 + $0x8] sm:$0xff] }
 0x15c   : > { %v714_v22 = vmul.bf16 1069105081, %v703_v19  ;;  %v690_v23 = vmul.f32 -0.5, %v674_v20  ;;  %v1228_v24 = vpop.f32.mrb[6].mxu0 }
 0x15d   : > { %v677_v25 = vmax.f32 %v1228_v24, 0.0  ;;  %v621_v26 = vpop.f32.mrb[7].mxu0 }
 0x15e   : > { %1366 = vpow.bf16 %v714_v22  ;;  %v704_v27 = vpack.c.bf16 %v691_v21, %v690_v23  ;;  %v676_v28 = vmax.f32 %v621_v26, 0.0  ;;  %v859_v22 = vld [vmem:[%s1529_s19] sm:$0xff]  ;;  %v862_v26 = vld [vmem:[%s1529_s19 + $0x18] sm:$0xff] }
 0x15f   : > { %v693_v29 = vmul.f32 -0.5, %v677_v25 }
 0x160   : > { %v717_v30 = vmul.bf16 1069105081, %v704_v27  ;;  %v692_v31 = vmul.f32 -0.5, %v676_v28  ;;  %v1231_v32 = vpop.f32.mrb[8].mxu0 }
 0x161   : > { %v679_v33 = vmax.f32 %v1231_v32, 0.0  ;;  %v631_v34 = vpop.f32.mrb[9].mxu0 }
 0x162   : > { %1368 = vpow.bf16 %v717_v30  ;;  %v705_v35 = vpack.c.bf16 %v693_v29, %v692_v31  ;;  %v678_v36 = vmax.f32 %v631_v34, 0.0  ;;  %v860_v30 = vld [vmem:[%s1529_s19 + $0x8] sm:$0xff] }
 0x163   : > { %v695_v37 = vmul.f32 -0.5, %v679_v33  ;;  %v881_v33 = vld [vmem:[%s1544_s22 + $0x30] sm:$0xff] }
 0x164   : > { %v720_v38 = vmul.bf16 1069105081, %v705_v35  ;;  %v694_v39 = vmul.f32 -0.5, %v678_v36  ;;  %v1234_v40 = vpop.f32.mrb[10].mxu0  ;;  %v879_v35 = vld [vmem:[%s1544_s22 + $0x20] sm:$0xff] }
 0x165   : > { %v1365_v41 = vpop.eup %1364  ;;  %v681_v42 = vmax.f32 %v1234_v40, 0.0  ;;  %v641_v43 = vpop.f32.mrb[11].mxu0 }
 0x166   : > { %1370 = vpow.bf16 %v720_v38  ;;  %v706_v44 = vpack.c.bf16 %v695_v37, %v694_v39  ;;  %v680_v45 = vmax.f32 %v641_v43, 0.0  ;;  %1257 = vmatprep.mubr.bf16.mxu1 %v1365_v41  ;;  %v882_v38 = vld [vmem:[%s1544_s22 + $0x38] sm:$0xff]  ;;  %v880_v41 = vld [vmem:[%s1544_s22 + $0x28] sm:$0xff] }
 0x167   : > { %v697_v46 = vmul.f32 -0.5, %v681_v42  ;;  %v865_v42 = vld [vmem:[%s1529_s19 + $0x30] sm:$0xff] }
 0x168   : > { %v723_v47 = vmul.bf16 1069105081, %v706_v44  ;;  %v696_v48 = vmul.f32 -0.5, %v680_v45  ;;  %v1237_v49 = vpop.f32.mrb[12].mxu0 }
 0x169   : > { %v1367_v50 = vpop.eup %1366  ;;  %v683_v51 = vmax.f32 %v1237_v49, 0.0  ;;  %v651_v52 = vpop.f32.mrb[13].mxu0 }
 0x16a   : > { %1372 = vpow.bf16 %v723_v47  ;;  %v707_v53 = vpack.c.bf16 %v697_v46, %v696_v48  ;;  %v682_v54 = vmax.f32 %v651_v52, 0.0  ;;  %1258 = vmatmul.mubr.bf16.vlgmr.msra.gmra.mrb[0].mxu1 %v1367_v50  ;;  %v863_v46 = vld [vmem:[%s1529_s19 + $0x20] sm:$0xff]  ;;  %v866_v50 = vld [vmem:[%s1529_s19 + $0x38] sm:$0xff] }
 0x16b   : > { %v699_v55 = vmul.f32 -0.5, %v683_v51 }
 0x16c   : > { %v726_v56 = vmul.bf16 1069105081, %v707_v53  ;;  %v698_v57 = vmul.f32 -0.5, %v682_v54  ;;  %v1240_v58 = vpop.f32.mrb[14].mxu0  ;;  %v864_v54 = vld [vmem:[%s1529_s19 + $0x28] sm:$0xff] }
 0x16d   : > { %v1369_v59 = vpop.eup %1368  ;;  %v685_v60 = vmax.f32 %v1240_v58, 0.0  ;;  %v661_v61 = vpop.f32.mrb[15].mxu0 }
 0x16e   : > { %1374 = vpow.bf16 %v726_v56  ;;  %v708_v62 = vpack.c.bf16 %v699_v55, %v698_v57  ;;  %v684_v63 = vmax.f32 %v661_v61, 0.0  ;;  %1261 = vmatprep.mubr.bf16.mxu1 %v1369_v59  ;;  %v885_v57 = vld [vmem:[%s1544_s22 + $0x50] sm:$0xff]  ;;  %v883_v59 = vld [vmem:[%s1544_s22 + $0x40] sm:$0xff] }
 0x16f   : > { %v701_v0 = vmul.f32 -0.5, %v685_v60 }
 0x170   : > { %v729_v1 = vmul.bf16 1069105081, %v708_v62  ;;  %v700_v2 = vmul.f32 -0.5, %v684_v63  ;;  %v886_v62 = vld [vmem:[%s1544_s22 + $0x58] sm:$0xff] }
 0x171   : > { %v1371_v3 = vpop.eup %1370 }
 0x172   : > { %1376 = vpow.bf16 %v729_v1  ;;  %v709_v4 = vpack.c.bf16 %v701_v0, %v700_v2  ;;  %1262 = vmatmul.mubr.bf16.gmra.mrb[4].mxu1 %v1371_v3  ;;  %v884_v1 = vld [vmem:[%s1544_s22 + $0x48] sm:$0xff]  ;;  %v869_v2 = vld [vmem:[%s1529_s19 + $0x50] sm:$0xff] }
 0x174   : > { %v732_v5 = vmul.bf16 1069105081, %v709_v4 }
 0x175   : > { %v1373_v6 = vpop.eup %1372 }
 0x176   : > { %1378 = vpow.bf16 %v732_v5  ;;  %1265 = vmatprep.mubr.bf16.mxu1 %v1373_v6  ;;  %v867_v6 = vld [vmem:[%s1529_s19 + $0x40] sm:$0xff] }
 0x179   : > { %v1375_v7 = vpop.eup %1374 }
 0x17a   : > { %1266 = vmatmul.mubr.bf16.gmra.mrb[8].mxu1 %v1375_v7 }
 0x17d   : > { %v1377_v8 = vpop.eup %1376 }
 0x17e   : > { %1269 = vmatprep.mubr.bf16.mxu1 %v1377_v8 }
 0x181   : > { %v1379_v9 = vpop.eup %1378 }
 0x182   : > { %1270 = vmatmul.mubr.bf16.gmra.mrb[12].mxu1 %v1379_v9 }
 0x23d   : > { %v1259_v12 = vpop.f32.mrb[0].mxu1 }
 0x23e   : > { %v893_v15 = vmul.f32 %v1259_v12, %v877_v10  ;;  %v792_v16 = vpop.f32.mrb[1].mxu1  ;;  %v870_v10 = vld [vmem:[%s1529_s19 + $0x58] sm:$0xff] }
 0x23f   : > { %v891_v19 = vmul.f32 %v875_v11, %v792_v16  ;;  %v1260_v20 = vpop.f32.mrb[2].mxu1 }
 0x240   : > { %v910_v21 = vmul.f32 %v1690_v13, %v893_v15  ;;  %v894_v23 = vmul.f32 %v1260_v20, %v878_v14  ;;  %v795_v24 = vpop.f32.mrb[3].mxu1  ;;  %v868_v15 = vld [vmem:[%s1529_s19 + $0x48] sm:$0xff]  ;;  %v887_v20 = vld [vmem:[%s1544_s22 + $0x60] sm:$0xff] }
 0x241   : > { %v908_v25 = vmul.f32 %v1690_v13, %v891_v19  ;;  %v892_v27 = vmul.f32 %v876_v17, %v795_v24 }
 0x242   : > { %v926_v28 = vadd.f32 %v910_v21, %v861_v18  ;;  %v911_v29 = vmul.f32 %v1690_v13, %v894_v23  ;;  %v889_v18 = vld [vmem:[%s1544_s22 + $0x70] sm:$0xff]  ;;  %v890_v23 = vld [vmem:[%s1544_s22 + $0x78] sm:$0xff] }
 0x243   : > { %v924_v31 = vadd.f32 %v908_v25, %v859_v22  ;;  %v909_v32 = vmul.f32 %v1690_v13, %v892_v27  ;;  %v873_v27 = vld [vmem:[%s1529_s19 + $0x70] sm:$0xff] }
 0x244   : > { %942 = vst.msk [vmem:[%s1529_s19 + $0x10] sm:$0xff] %vm428_vm1, %v926_v28  ;;  %v927_v34 = vadd.f32 %v911_v29, %v862_v26  ;;  %v888_v26 = vld [vmem:[%s1544_s22 + $0x68] sm:$0xff] }
 0x245   : > { %940 = vst.msk [vmem:[%s1529_s19] sm:$0xff] %vm428_vm1, %v924_v31  ;;  %v925_v36 = vadd.f32 %v909_v32, %v860_v30  ;;  %v1263_v37 = vpop.f32.mrb[4].mxu1  ;;  %v871_v31 = vld [vmem:[%s1529_s19 + $0x60] sm:$0xff] }
 0x246   : > { %943 = vst.msk [vmem:[%s1529_s19 + $0x18] sm:$0xff] %vm428_vm1, %v927_v34  ;;  %v897_v39 = vmul.f32 %v1263_v37, %v881_v33  ;;  %v808_v40 = vpop.f32.mrb[5].mxu1 }
 0x247   : > { %941 = vst.msk [vmem:[%s1529_s19 + $0x8] sm:$0xff] %vm428_vm1, %v925_v36  ;;  %v895_v43 = vmul.f32 %v879_v35, %v808_v40  ;;  %v1264_v44 = vpop.f32.mrb[6].mxu1  ;;  %v874_v35 = vld [vmem:[%s1529_s19 + $0x78] sm:$0xff] }
 0x248   : > { %v914_v45 = vmul.f32 %v1690_v13, %v897_v39  ;;  %v898_v47 = vmul.f32 %v1264_v44, %v882_v38  ;;  %v811_v48 = vpop.f32.mrb[7].mxu1  ;;  %v872_v39 = vld [vmem:[%s1529_s19 + $0x68] sm:$0xff] }
 0x249   : > { %v912_v49 = vmul.f32 %v1690_v13, %v895_v43  ;;  %v896_v51 = vmul.f32 %v880_v41, %v811_v48 }
 0x24a   : > { %v930_v52 = vadd.f32 %v914_v45, %v865_v42  ;;  %v915_v53 = vmul.f32 %v1690_v13, %v898_v47 }
 0x24b   : > { %v928_v55 = vadd.f32 %v912_v49, %v863_v46  ;;  %v913_v56 = vmul.f32 %v1690_v13, %v896_v51 }
 0x24c   : > { %946 = vst.msk [vmem:[%s1529_s19 + $0x30] sm:$0xff] %vm428_vm1, %v930_v52  ;;  %v931_v58 = vadd.f32 %v915_v53, %v866_v50 }
 0x24d   : > { %944 = vst.msk [vmem:[%s1529_s19 + $0x20] sm:$0xff] %vm428_vm1, %v928_v55  ;;  %v929_v60 = vadd.f32 %v913_v56, %v864_v54  ;;  %v1267_v61 = vpop.f32.mrb[8].mxu1 }
 0x24e   : > { %947 = vst.msk [vmem:[%s1529_s19 + $0x38] sm:$0xff] %vm428_vm1, %v931_v58  ;;  %v901_v63 = vmul.f32 %v1267_v61, %v885_v57  ;;  %v824_v0 = vpop.f32.mrb[9].mxu1 }
 0x24f   : > { %945 = vst.msk [vmem:[%s1529_s19 + $0x28] sm:$0xff] %vm428_vm1, %v929_v60  ;;  %v899_v3 = vmul.f32 %v883_v59, %v824_v0  ;;  %v1268_v4 = vpop.f32.mrb[10].mxu1 }
 0x250   : > { %v918_v5 = vmul.f32 %v1690_v13, %v901_v63  ;;  %v902_v7 = vmul.f32 %v1268_v4, %v886_v62  ;;  %v827_v8 = vpop.f32.mrb[11].mxu1 }
 0x251   : > { %v916_v9 = vmul.f32 %v1690_v13, %v899_v3  ;;  %v900_v11 = vmul.f32 %v884_v1, %v827_v8 }
 0x252   : > { %v934_v12 = vadd.f32 %v918_v5, %v869_v2  ;;  %v919_v14 = vmul.f32 %v1690_v13, %v902_v7 }
 0x253   : > { %v932_v16 = vadd.f32 %v916_v9, %v867_v6  ;;  %v917_v17 = vmul.f32 %v1690_v13, %v900_v11 }
 0x254   : > { %950 = vst.msk [vmem:[%s1529_s19 + $0x50] sm:$0xff] %vm428_vm1, %v934_v12  ;;  %v935_v19 = vadd.f32 %v919_v14, %v870_v10 }
 0x255   : > { %948 = vst.msk [vmem:[%s1529_s19 + $0x40] sm:$0xff] %vm428_vm1, %v932_v16  ;;  %v933_v21 = vadd.f32 %v917_v17, %v868_v15  ;;  %v1271_v22 = vpop.f32.mrb[12].mxu1 }
 0x256   : > { %951 = vst.msk [vmem:[%s1529_s19 + $0x58] sm:$0xff] %vm428_vm1, %v935_v19  ;;  %v905_v24 = vmul.f32 %v1271_v22, %v889_v18  ;;  %v840_v25 = vpop.f32.mrb[13].mxu1 }
 0x257   : > { %949 = vst.msk [vmem:[%s1529_s19 + $0x48] sm:$0xff] %vm428_vm1, %v933_v21  ;;  %v903_v28 = vmul.f32 %v887_v20, %v840_v25  ;;  %v1272_v29 = vpop.f32.mrb[14].mxu1 }
 0x258   : > { %v922_v30 = vmul.f32 %v1690_v13, %v905_v24  ;;  %v906_v32 = vmul.f32 %v1272_v29, %v890_v23  ;;  %v843_v33 = vpop.f32.mrb[15].mxu1 }
 0x259   : > { %v920_v34 = vmul.f32 %v1690_v13, %v903_v28  ;;  %v904_v36 = vmul.f32 %v888_v26, %v843_v33 }
 0x25a   : > { %v938_v37 = vadd.f32 %v922_v30, %v873_v27  ;;  %v923_v38 = vmul.f32 %v1690_v13, %v906_v32 }
 0x25b   : > { %v936_v40 = vadd.f32 %v920_v34, %v871_v31  ;;  %v921_v41 = vmul.f32 %v1690_v13, %v904_v36 }
 0x25c   : > { %954 = vst.msk [vmem:[%s1529_s19 + $0x70] sm:$0xff] %vm428_vm1, %v938_v37  ;;  %v939_v42 = vadd.f32 %v923_v38, %v874_v35 }
 0x25d   : > { %952 = vst.msk [vmem:[%s1529_s19 + $0x60] sm:$0xff] %vm428_vm1, %v936_v40  ;;  %v937_v43 = vadd.f32 %v921_v41, %v872_v39 }
 0x25e   : > { %955 = vst.msk [vmem:[%s1529_s19 + $0x78] sm:$0xff] %vm428_vm1, %v939_v42 }
 0x25f   : > { %953 = vst.msk [vmem:[%s1529_s19 + $0x68] sm:$0xff] %vm428_vm1, %v937_v43 }
 0x260 PF: > { %s26_s9 = sadd.s32 1, %s1444_s9   ;;  %s1794_s1 = smov %s1436_s7 }
 0x261   : > { %p23_p8 = scmp.ge.s32.totalorder %s26_s9, 8   ;;  %s1795_s30 = smov %s1440_s8 }
 0x262   : > { %s1796_s7 = smov %s1799_s10  ;;  %s1797_s8 = smov %s1803_s11 }
 0x263   :  { %25 = sbr.rel (!%p23_p8) target bundleno = 28 (0x1c), region = 79 }

</bundles_post_ra>
